<compile_context>
chip_gen: v6e
topology: v6e:2x2x1
jax: 0.10.0
libtpu: 0.0.40
codegen_flags: <defaults>
</compile_context>

<pallas_src>
import math

import jax
import jax.numpy as jnp
from jax import lax
from jax.experimental import pallas as pl
from jax.experimental.pallas import tpu as pltpu


def _round_up(x, m):
    return (x + m - 1) // m * m


def _cdiv(a, b):
    return (a + b - 1) // b


def _gelu_exact_f32(h):
    # torch nn.GELU default: 0.5*x*(1 + erf(x/sqrt(2)))
    # TODO(synk): if tolerances allow, the tanh approximation would move work from
    # the VALU (long erf polynomial) to the otherwise-idle EUP slot.
    return 0.5 * h * (1.0 + lax.erf(h * (1.0 / math.sqrt(2.0))))


def _mlp_kernel_fused(x_ref, w1_ref, b1_ref, w2_ref, b2_ref, o_ref):
    # Whole hidden dim resident: no accumulator scratch, direct store.
    # x_ref  : (TM, C_in)     w1_ref : (C_in, C_hid)   b1_ref : (1, C_hid)
    # w2_ref : (C_hid, C_out) b2_ref : (1, C_out)      o_ref  : (TM, C_out)
    x = x_ref[...]
    h = jnp.dot(x, w1_ref[...], preferred_element_type=jnp.float32)
    h = h + b1_ref[...].astype(jnp.float32)
    h = _gelu_exact_f32(h)
    # dropout p=0.0 -> identity
    o = jnp.dot(h.astype(x.dtype), w2_ref[...], preferred_element_type=jnp.float32)
    o_ref[...] = (o + b2_ref[...].astype(jnp.float32)).astype(o_ref.dtype)


def _mlp_kernel_chunked(x_ref, w1_ref, b1_ref, w2_ref, b2_ref, o_ref, acc_ref):
    # grid = (token tiles [parallel], hidden chunks [arbitrary / reduction])
    # acc_ref: (TM, C_out) f32, resident across the hidden axis.
    k = pl.program_id(1)
    x = x_ref[...]
    h = jnp.dot(x, w1_ref[...], preferred_element_type=jnp.float32)
    h = h + b1_ref[...].astype(jnp.float32)
    h = _gelu_exact_f32(h)
    # dropout p=0.0 -> identity
    partial = jnp.dot(h.astype(x.dtype), w2_ref[...],
                      preferred_element_type=jnp.float32)

    @pl.when(k == 0)
    def _first():
        acc_ref[...] = partial            # direct assign: no zero-init round-trip

    @pl.when(k > 0)
    def _accum():
        acc_ref[...] += partial

    @pl.when(k == pl.num_programs(1) - 1)
    def _finalize():
        o_ref[...] = (acc_ref[...] + b2_ref[...].astype(jnp.float32)
                      ).astype(o_ref.dtype)


def mlp_pallas(x, w1_t, b1, w2_t, b2, *, tile_m=None, tile_h=None):
    """Fused MLP forward.

    x    : [B, N, C_in]
    w1_t : [C_in, C_hid]  fc1 weight, pre-transposed ONCE from torch's [C_hid, C_in]
    b1   : [C_hid]
    w2_t : [C_hid, C_out] fc2 weight, pre-transposed ONCE from torch's [C_out, C_hid]
    b2   : [C_out]
    tile_m : token-tile rows (default: auto, 512 / 1024 when hidden chunking)
    tile_h : hidden-dim chunk (default: auto-selected from VMEM capacity)
    """
    B, N, C_in = x.shape
    C_in_w, C_hid = w1_t.shape
    C_hid_w, C_out = w2_t.shape
    assert C_in_w == C_in and C_hid_w == C_hid
    assert b1.shape == (C_hid,) and b2.shape == (C_out,)

    tokens = B * N
    dt_bytes = jnp.dtype(x.dtype).itemsize
    # sublane packing: f32 -> 8 rows/vreg, bf16/f16 -> 16, int8/fp8 -> 32
    min_sub = max(8, 32 // dt_bytes)

    # ---- per-generation VMEM sizing -------------------------------------
    try:
        vmem_cap = int(pltpu.get_tpu_info().vmem_capacity_bytes)
    except Exception:
        vmem_cap = 64 * 1024 * 1024          # conservative default (v7x per-TC)
    if vmem_cap <= 0:
        vmem_cap = 64 * 1024 * 1024
    if vmem_cap <= 64 * 1024 * 1024:
        # v7x: never request all of physical VMEM; leave Mosaic headroom.
        vmem_budget = (3 * vmem_cap) // 4        # ~48 MiB working budget
        vmem_cap_limit = (7 * vmem_cap) // 8     # ~56 MiB hard cap on the limit
    else:
        # v5e / v6e: 128 MiB physical -> keep resident-weights path usable.
        vmem_budget = min(vmem_cap - 28 * 2**20, 100 * 2**20)
        vmem_cap_limit = min(vmem_cap - 16 * 2**20, 110 * 2**20)

    def _footprint(tm_, th_, n_hid_, wbuf_):
        weights = wbuf_ * dt_bytes * (C_in * th_ + th_ * C_out)   # w1 / w2 blocks
        biases = 2 * dt_bytes * (th_ + C_out)                     # b1 / b2 blocks
        io = 2 * dt_bytes * tm_ * (C_in + C_out)                  # x / out (2-buffered)
        inter = tm_ * th_ * (4 + dt_bytes)                        # f32 GELU tile + cast
        acc = 0 if n_hid_ == 1 else 4 * tm_ * C_out               # f32 accumulator
        return weights + biases + io + inter + acc

    # ---- token tile ------------------------------------------------------
    if tile_m is None:
        tile_m = 512
        if (tile_h is None and tokens >= 2 * 1024
                and _footprint(512, C_hid, 1, 1) > vmem_budget):
            # Chunked path re-streams weights every token tile: bigger token tiles
            # keep arithmetic intensity (~tile_m flop/weight-byte) above the HBM
            # roofline on every generation.
            tile_m = 1024
    tm = max(min_sub, min(_round_up(tile_m, min_sub), _round_up(tokens, min_sub)))
    # Keep >= 2 token tiles whenever the batch allows (both v7x TCs get work).
    if tokens <= tm and tokens >= 2 * min_sub:
        tm = _round_up(_cdiv(tokens, 2), min_sub)
    tokens_p = _round_up(tokens, tm)
    n_tok = tokens_p // tm

    # ---- hidden (reduction) chunk ----------------------------------------
    w_buffers = 2
    if tile_h is not None:
        th = int(tile_h)
        assert C_hid % th == 0
        assert th == C_hid or th % 128 == 0
        n_hid = C_hid // th
        if n_hid == 1 and _footprint(tm, th, 1, 2) > vmem_budget:
            w_buffers = 1
    elif _footprint(tm, C_hid, 1, 2) <= vmem_budget:
        th, n_hid = C_hid, 1                       # weights resident, double-buffered
    elif _footprint(tm, C_hid, 1, 1) <= vmem_budget:
        th, n_hid, w_buffers = C_hid, 1, 1         # resident, single-buffered (constant idx)
    else:
        # Chunk the hidden dim: largest 128-aligned divisor that fits the budget.
        cands = [c for c in range(128, C_hid, 128) if C_hid % c == 0]
        cands.sort(reverse=True)
        th = next((c for c in cands
                   if _footprint(tm, c, C_hid // c, 2) <= vmem_budget),
                  (cands[-1] if cands else C_hid))
        n_hid = C_hid // th

    footprint = _footprint(tm, th, n_hid, w_buffers)
    vmem_limit = int(min(max(32 * 2**20, footprint + footprint // 4 + 2 * 2**20),
                         vmem_cap_limit))
    # Never request less than what we actually use (pathological fallback case).
    vmem_limit = int(max(vmem_limit, min(footprint + 2 * 2**20,
                                         vmem_cap - 2 * 2**20)))

    # ---- data prep ---------------------------------------------------------
    x2d = x.reshape(tokens, C_in)
    if tokens_p != tokens:
        x2d = jnp.pad(x2d, ((0, tokens_p - tokens), (0, 0)))
    b1_2d = b1.reshape(1, C_hid)
    b2_2d = b2.reshape(1, C_out)

    w_reads = 1 if n_hid == 1 else n_tok   # chunked path re-streams weights per token tile
    cost = pl.CostEstimate(
        flops=2 * tokens * (C_in * C_hid + C_hid * C_out),
        transcendentals=tokens * C_hid,
        bytes_accessed=dt_bytes * (tokens_p * (C_in + C_out)
                                   + w_reads * (C_in * C_hid + C_hid * C_out)),
    )

    if n_hid == 1:
        def _wspec(shape, imap):
            if w_buffers == 1:
                # Constant block index -> never re-fetched; drop the second buffer.
                return pl.BlockSpec(shape, imap, pipeline_mode=pl.Buffered(1))
            return pl.BlockSpec(shape, imap)

        grid_spec = pltpu.PrefetchScalarGridSpec(
            num_scalar_prefetch=0,
            grid=(n_tok,),
            in_specs=[
                pl.BlockSpec((tm, C_in), lambda i: (i, 0)),      # token tile
                _wspec((C_in, C_hid), lambda i: (0, 0)),         # fc1 weight (resident)
                pl.BlockSpec((1, C_hid), lambda i: (0, 0)),      # fc1 bias
                _wspec((C_hid, C_out), lambda i: (0, 0)),        # fc2 weight (resident)
                pl.BlockSpec((1, C_out), lambda i: (0, 0)),      # fc2 bias
            ],
            out_specs=pl.BlockSpec((tm, C_out), lambda i: (i, 0)),
        )
        kernel = _mlp_kernel_fused
        dims = ("parallel",)
    else:
        grid_spec = pltpu.PrefetchScalarGridSpec(
            num_scalar_prefetch=0,
            grid=(n_tok, n_hid),
            in_specs=[
                pl.BlockSpec((tm, C_in), lambda i, k: (i, 0)),   # token tile
                pl.BlockSpec((C_in, th), lambda i, k: (0, k)),   # fc1 weight chunk
                pl.BlockSpec((1, th), lambda i, k: (0, k)),      # fc1 bias chunk
                pl.BlockSpec((th, C_out), lambda i, k: (k, 0)),  # fc2 weight chunk
                pl.BlockSpec((1, C_out), lambda i, k: (0, 0)),   # fc2 bias
            ],
            out_specs=pl.BlockSpec((tm, C_out), lambda i, k: (i, 0)),
            scratch_shapes=[pltpu.VMEM((tm, C_out), jnp.float32)],
        )
        kernel = _mlp_kernel_chunked
        dims = ("parallel", "arbitrary")

    out2d = pl.pallas_call(
        kernel,
        out_shape=jax.ShapeDtypeStruct((tokens_p, C_out), x.dtype),
        grid_spec=grid_spec,
        compiler_params=pltpu.CompilerParams(
            dimension_semantics=dims,
            vmem_limit_bytes=vmem_limit,
        ),
        cost_estimate=cost,
    )(x2d, w1_t, b1_2d, w2_t, b2_2d)

    return out2d[:tokens].reshape(B, N, C_out)


def mlp_reference(x, w1, b1, w2, b2):
    # w1/w2 in torch layout: (C_hid, C_in) / (C_out, C_hid)
    h = jnp.einsum("bnc,hc->bnh", x, w1) + b1
    h = 0.5 * h * (1.0 + lax.erf(h / math.sqrt(2.0)))
    o = jnp.einsum("bnh,oh->bno", h, w2) + b2
    return o


def _make_params(key, c_in, c_hid, c_out):
    k1, k2, k3, k4 = jax.random.split(key, 4)
    bound1 = 1.0 / math.sqrt(c_in)
    w1 = jax.random.uniform(k1, (c_hid, c_in), minval=-bound1, maxval=bound1,
                            dtype=jnp.float32)
    b1 = jax.random.uniform(k2, (c_hid,), minval=-bound1, maxval=bound1,
                            dtype=jnp.float32)
    bound2 = 1.0 / math.sqrt(c_hid)
    w2 = jax.random.uniform(k3, (c_out, c_hid), minval=-bound2, maxval=bound2,
                            dtype=jnp.float32)
    b2 = jax.random.uniform(k4, (c_out,), minval=-bound2, maxval=bound2,
                            dtype=jnp.float32)
    return w1, b1, w2, b2


if __name__ == "__main__":
    key = jax.random.PRNGKey(0)
    kx, kp, kp2 = jax.random.split(key, 3)

    # ---- test 1: fused (resident-weights) path, module-consistent small shapes ---
    B, N = 2, 8
    in_features, hidden_features, out_features = 32, 64, 32
    x = jax.random.normal(kx, (B, N, in_features), dtype=jnp.float32)
    w1, b1, w2, b2 = _make_params(kp, in_features, hidden_features, out_features)
    # Transpose ONCE at parameter-load time (not per forward call).
    w1_t, w2_t = jnp.transpose(w1), jnp.transpose(w2)

    out = jax.block_until_ready(mlp_pallas(x, w1_t, b1, w2_t, b2))
    ref = mlp_reference(x, w1, b1, w2, b2)
    assert out.shape == (B, N, out_features)
    assert jnp.allclose(out, ref, atol=1e-5, rtol=1e-5), "fused path mismatch"

    # ---- test 2: exercise the hidden-chunked (reduction) path ---------------
    hidden_features2 = 256
    w1b, b1b, w2b, b2b = _make_params(kp2, in_features, hidden_features2, out_features)
    w1b_t, w2b_t = jnp.transpose(w1b), jnp.transpose(w2b)
    out2 = jax.block_until_ready(
        mlp_pallas(x, w1b_t, b1b, w2b_t, b2b, tile_h=128))
    ref2 = mlp_reference(x, w1b, b1b, w2b, b2b)
    assert out2.shape == (B, N, out_features)
    assert jnp.allclose(out2, ref2, atol=1e-5, rtol=1e-5), "chunked path mismatch"

    print("KERNEL_OK")
</pallas_src>

<mosaic_0001>
module attributes {stable_mosaic.version = 11 : i64} {
  func.func @_mlp_kernel_fused(%arg0: i32, %arg1: memref<8x32xf32, #tpu.memory_space<vmem>>, %arg2: memref<32x64xf32, #tpu.memory_space<vmem>>, %arg3: memref<1x64xf32, #tpu.memory_space<vmem>>, %arg4: memref<64x32xf32, #tpu.memory_space<vmem>>, %arg5: memref<1x32xf32, #tpu.memory_space<vmem>>, %arg6: memref<8x32xf32, #tpu.memory_space<vmem>>) attributes {dimension_semantics = [#tpu.dimension_semantics<parallel>], iteration_bounds = array<i64: 2>, scalar_prefetch = 0 : i64, scratch_operands = 0 : i64, tpu.core_type = #tpu.core_type<tc>, window_params = [{transform_indices = @transform_0, window_bounds = array<i64: 8, 32>}, {pipeline_mode = #tpu.pipeline_mode<synchronous>, transform_indices = @transform_1, window_bounds = array<i64: 32, 64>}, {pipeline_mode = #tpu.pipeline_mode<synchronous>, transform_indices = @transform_2, window_bounds = array<i64: 1, 64>}, {pipeline_mode = #tpu.pipeline_mode<synchronous>, transform_indices = @transform_3, window_bounds = array<i64: 64, 32>}, {pipeline_mode = #tpu.pipeline_mode<synchronous>, transform_indices = @transform_4, window_bounds = array<i64: 1, 32>}, {transform_indices = @transform_5, window_bounds = array<i64: 8, 32>}]} {
    %c0 = arith.constant 0 : index
    %c0_0 = arith.constant 0 : index
    %0 = vector.load %arg1[%c0, %c0_0] : memref<8x32xf32, #tpu.memory_space<vmem>>, vector<8x32xf32>
    %c0_1 = arith.constant 0 : index
    %c0_2 = arith.constant 0 : index
    %1 = vector.load %arg2[%c0_1, %c0_2] : memref<32x64xf32, #tpu.memory_space<vmem>>, vector<32x64xf32>
    %cst = arith.constant dense<0.000000e+00> : vector<8x64xf32>
    %2 = tpu.matmul %0, %1, %cst {dimension_numbers = #tpu.dot_dimension_numbers<[1], [0], [0], [1], [0, 0, 1, 1], [], []>} : vector<8x32xf32>, vector<32x64xf32>, vector<8x64xf32> -> vector<8x64xf32>
    %c0_3 = arith.constant 0 : index
    %c0_4 = arith.constant 0 : index
    %3 = vector.load %arg3[%c0_3, %c0_4] : memref<1x64xf32, #tpu.memory_space<vmem>>, vector<1x64xf32>
    %4 = vector.broadcast %3 : vector<1x64xf32> to vector<8x64xf32>
    %5 = arith.addf %2, %4 : vector<8x64xf32>
    %cst_5 = arith.constant 5.000000e-01 : f32
    %6 = vector.broadcast %cst_5 : f32 to vector<8x64xf32>
    %7 = arith.mulf %6, %5 : vector<8x64xf32>
    %cst_6 = arith.constant 0.707106769 : f32
    %8 = vector.broadcast %cst_6 : f32 to vector<8x64xf32>
    %9 = arith.mulf %5, %8 : vector<8x64xf32>
    %10 = math.erf %9 : vector<8x64xf32>
    %cst_7 = arith.constant 1.000000e+00 : f32
    %11 = vector.broadcast %cst_7 : f32 to vector<8x64xf32>
    %12 = arith.addf %11, %10 : vector<8x64xf32>
    %13 = arith.mulf %7, %12 : vector<8x64xf32>
    %c0_8 = arith.constant 0 : index
    %c0_9 = arith.constant 0 : index
    %14 = vector.load %arg4[%c0_8, %c0_9] : memref<64x32xf32, #tpu.memory_space<vmem>>, vector<64x32xf32>
    %cst_10 = arith.constant dense<0.000000e+00> : vector<8x32xf32>
    %15 = tpu.matmul %13, %14, %cst_10 {dimension_numbers = #tpu.dot_dimension_numbers<[1], [0], [0], [1], [0, 0, 1, 1], [], []>} : vector<8x64xf32>, vector<64x32xf32>, vector<8x32xf32> -> vector<8x32xf32>
    %c0_11 = arith.constant 0 : index
    %c0_12 = arith.constant 0 : index
    %16 = vector.load %arg5[%c0_11, %c0_12] : memref<1x32xf32, #tpu.memory_space<vmem>>, vector<1x32xf32>
    %17 = vector.broadcast %16 : vector<1x32xf32> to vector<8x32xf32>
    %18 = arith.addf %15, %17 : vector<8x32xf32>
    %c0_13 = arith.constant 0 : index
    %c0_14 = arith.constant 0 : index
    %19 = vector.load %arg6[%c0_13, %c0_14] : memref<8x32xf32, #tpu.memory_space<vmem>>, vector<8x32xf32>
    tpu.vector_store %arg6[%c0_13, %c0_14], %18 {strides = array<i32>} : memref<8x32xf32, #tpu.memory_space<vmem>>, vector<8x32xf32>,
    return
  }
  func.func @transform_0(%arg0: i32) -> (i32, i32) {
    %c0_i32 = arith.constant 0 : i32
    %c0_i32_0 = arith.constant 0 : i32
    return %arg0, %c0_i32 : i32, i32
  }
  func.func @transform_1(%arg0: i32) -> (i32, i32) {
    %c0_i32 = arith.constant 0 : i32
    %c0_i32_0 = arith.constant 0 : i32
    %c0_i32_1 = arith.constant 0 : i32
    return %c0_i32, %c0_i32_0 : i32, i32
  }
  func.func @transform_2(%arg0: i32) -> (i32, i32) {
    %c0_i32 = arith.constant 0 : i32
    %c0_i32_0 = arith.constant 0 : i32
    %c0_i32_1 = arith.constant 0 : i32
    return %c0_i32, %c0_i32_0 : i32, i32
  }
  func.func @transform_3(%arg0: i32) -> (i32, i32) {
    %c0_i32 = arith.constant 0 : i32
    %c0_i32_0 = arith.constant 0 : i32
    %c0_i32_1 = arith.constant 0 : i32
    return %c0_i32, %c0_i32_0 : i32, i32
  }
  func.func @transform_4(%arg0: i32) -> (i32, i32) {
    %c0_i32 = arith.constant 0 : i32
    %c0_i32_0 = arith.constant 0 : i32
    %c0_i32_1 = arith.constant 0 : i32
    return %c0_i32, %c0_i32_0 : i32, i32
  }
  func.func @transform_5(%arg0: i32) -> (i32, i32) {
    %c0_i32 = arith.constant 0 : i32
    %c0_i32_0 = arith.constant 0 : i32
    return %arg0, %c0_i32 : i32, i32
  }
}

</mosaic_0001>

<bundles_post_ra>
// kernel: tpu_custom_call.1
= control target key start
LH: loop header
LB: loop body
LE: loop exit
PB: predicated region body
PF: predicated region fallthrough
CT: control target
= control target key end

     0   :  { %10 = vsyncpa [#allocation3], 0  ;;  %s807_s0 = inlined_call_operand.vmem [shape: f32[16,32], index: 0, kind: input, shape index: {}]   ;;  %s808_s1 = inlined_call_operand.vmem [shape: f32[32,64], index: 1, kind: input, shape index: {}]   ;;  %s809_s2 = inlined_call_operand.vmem [shape: f32[1,64], index: 2, kind: input, shape index: {}]   ;;  %s810_s3 = inlined_call_operand.vmem [shape: f32[64,32], index: 3, kind: input, shape index: {}]   ;;  %s811_s4 = inlined_call_operand.vmem [shape: f32[1,32], index: 4, kind: input, shape index: {}]   ;;  %s812_s5 = inlined_call_operand.hbm [shape: f32[16,32], index: 5, kind: output, shape index: {}]  }
   0x1   :  { %12 = vsyncpa [#allocation3 + $0x1], 0  ;;  %s670_s18 = smov 0   ;;  %s672_s19 = smov 0  }
   0x2   :  { %s674_s20 = smov 0   ;;  %s676_s21 = smov 0  }
   0x3 LB: > { %s691_s22 = sadd.s32 4294967295, %s635_s21   ;;  %s474_s23 = sadd.s32 4294967294, %s635_s21   ;;  %s635_s21 = sphi %s676_s21, %s818_s21   ;;  %s631_s20 = sphi %s674_s20, %s817_s20   ;;  %s627_s19 = sphi %s672_s19, %s816_s19   ;;  %s623_s18 = sphi %s670_s18, %s815_s18  }
   0x4   : > { %s695_s24 = sadd.s32 1, %s635_s21   ;;  %s135_s25 = sadd.s32 1, %s631_s20 }
   0x5   : > { %s132_s26 = ssub.s32 %s635_s21, %s695_s24  ;;  %p145_p0 = scmp.ne.s32.totalorder %s631_s20, %s627_s19 }
   0x6   : > { %p133_p1 = scmp.eq.s32.totalorder %s132_s26, 0  ;;  %p146_p2 = scmp.eq.s32.totalorder %s691_s22, 1 }
   0x7   : > { %p151_p3 = scmp.ne.s32.totalorder %s627_s19, %s623_s18  ;;  %p152_p4 = scmp.eq.s32.totalorder %s474_s23, 1 }
   0x8   : > { %s706_s27 = scalar_select %p133_p1, %s631_s20, %s135_s25  }
   0x9   : > { %p708_p5 = por %p146_p2, %p145_p0  ;;  %p712_p6 = por %p152_p4, %p151_p3 }
   0xa   : > { %p477_p7 = scmp.ge.s32.totalorder %s635_s21, 1  ;;  %p189_p8 = scmp.lt.s32.totalorder %s635_s21, 3 }
   0xc   : > { %p190_p9 = pnand %p477_p7, %p189_p8 }
   0xd   : > { %p216_p10 = scmp.lt.s32.totalorder (!%p190_p9), %s691_s22, 1  ;;  %s213_s26 = sand.u32 (!%p190_p9), 1, %s627_s19  }
   0xe   : > { %193 = sbr.rel (%p190_p9) target bundleno = 451 (0x1c3), region = 40  ;;  %s478_s30 = sshll.u32 (!%p190_p9), %s213_s26, 3 }
   0xf   : > { %s485_s8 = sshll.u32 (!%p190_p9), %s691_s22, 7  ;;  %s402_s14 = scalar_lea.sflag (!%p190_p9), [#allocation3], %s213_s26 }
  0x10   : > { %s771_s13 = scalar_lea.hbm (!%p190_p9), %s812_s5, %s485_s8 }
  0x13   : > { %v224_v0 = vld [vmem:[%s808_s1 + $0x18] sm:$0xff]  ;;  %v637_v1 = vmov 0.0   ;;  %v223_v2 = vld [vmem:[%s808_s1 + $0x10] sm:$0xff]  ;;  %vm638_vm0 = vmmov 0   ;;  %s217_s9 = scalar_select %p216_p10, %s691_s22, 1  ;;  %v222_v3 = vld [vmem:[%s808_s1 + $0x8] sm:$0xff] }
  0x14   : > { %502 = vmatprep.subr.mxu0 %v637_v1  ;;  %510 = vmatprep.mubr.msk.f32.mxu0 %vm638_vm0, %v637_v1  ;;  %v221_v4 = vld [vmem:[%s808_s1] sm:$0xff]  ;;  %vm232_vm1 = vcmask 261120   ;;  %v318_v6 = vld [vmem:[%s810_s3 + $0x38] sm:$0xff]  ;;  %v317_v7 = vld [vmem:[%s810_s3 + $0x30] sm:$0xff]  ;;  %vm326_vm2 = vcmask 523264   ;;  %s639_s22 = smov [#allocation2]  }
  0x15   : > { %503 = vmatpush3.msra.mxu0 %v224_v0  ;;  %513 = vmatprep.subr.mxu1 %v637_v1  ;;  %s479_s12 = sshll.u32 %s217_s9, 3  ;;  %v316_v8 = vld [vmem:[%s810_s3 + $0x28] sm:$0xff]  ;;  %v315_v9 = vld [vmem:[%s810_s3 + $0x20] sm:$0xff]  ;;  %v314_v10 = vld [vmem:[%s810_s3 + $0x18] sm:$0xff]  ;;  %s215_s9 = scalar_lea.vmem [#allocation2], %s478_s30 }
  0x16   : > { %504 = vmatprep.subr.mxu0 %v637_v1  ;;  %529 = vmatprep.mubr.msk.f32.mxu1 %vm638_vm0, %v637_v1  ;;  %s219_s17 = scalar_lea.vmem %s807_s0, %s479_s12  ;;  %v313_v11 = vld [vmem:[%s810_s3 + $0x10] sm:$0xff]  ;;  %v312_v12 = vld [vmem:[%s810_s3 + $0x8] sm:$0xff]  ;;  %v311_v13 = vld [vmem:[%s810_s3] sm:$0xff]  ;;  %s415_s10 = sshll.u32 %s215_s9, 4  ;;  %s416_s10 = int_to_ptr.vmem [resolvable:$true] %s415_s10 }
  0x17   : > { %505 = vmatpush3.msra.mxu0 %v223_v2  ;;  %v220_v5 = vld [vmem:[%s219_s17] sm:$0xff]  ;;  %514 = vmatpush3.msra.mxu1 %v318_v6  ;;  %s575_s15 = scalar_lea.vmem %s416_s10, 128  ;;  %s579_s16 = sshll.u32 %s639_s22, 4  ;;  %s580_s16 = int_to_ptr.vmem [resolvable:$false] %s579_s16 }
  0x18   : > { %506 = vmatprep.subr.mxu0 %v637_v1  ;;  %515 = vmatprep.subr.mxu1 %v637_v1  ;;  %v480_v14 = vld [vmem:[%s809_s2] ss:$0 sm:$0xff]  ;;  %p576_p11 = scmp.ne.s32.totalorder %s416_s10, %s575_s15  ;;  %s581_s17 = scalar_lea.vmem %s580_s16, 256 }
  0x19   : > { %507 = vmatpush3.msra.mxu0 %v222_v3  ;;  %516 = vmatpush3.msra.mxu1 %v317_v7  ;;  %v482_v23 = vld [vmem:[%s811_s4] ss:$0 sm:$0xff]  ;;  %p582_p0 = scmp.lt.s32.totalorder %s416_s10, %s580_s16  ;;  %p583_p1 = scmp.lt.s32.totalorder %s581_s17, %s575_s15 }
  0x1a   : > { %508 = vmatprep.subr.mxu0 %v637_v1  ;;  %517 = vmatprep.subr.mxu1 %v637_v1  ;;  %p577_p12 = pnand %p576_p11, %p708_p5 }
  0x1b   : > { %509 = vmatpush3.msra.mxu0 %v221_v4  ;;  %518 = vmatpush3.msra.mxu1 %v316_v8  ;;  %p584_p2 = por %p583_p1, %p582_p0 }
  0x1c   : > { %511 = vmatmul.mubr.msk.f32.vlgmr.msra.gmra.mxu0 %vm232_vm1, %v220_v5  ;;  %519 = vmatprep.subr.mxu1 %v637_v1  ;;  %p578_p13 = pneg %p577_p12 }
  0x1d   : > { %520 = vmatpush3.msra.mxu1 %v315_v9 }
  0x1e   : > { %521 = vmatprep.subr.mxu1 %v637_v1  ;;  %p585_p3 = pnand %p584_p2, %p578_p13 }
  0x1f   : > { %522 = vmatpush3.msra.mxu1 %v314_v10 }
  0x20   : > { %523 = vmatprep.subr.mxu1 %v637_v1 }
  0x21   : > { %524 = vmatpush3.msra.mxu1 %v313_v11 }
  0x22   : > { %525 = vmatprep.subr.mxu1 %v637_v1 }
  0x23   : > { %526 = vmatpush3.msra.mxu1 %v312_v12 }
  0x24   : > { %527 = vmatprep.subr.mxu1 %v637_v1 }
  0x25   : > { %528 = vmatpush3.msra.mxu1 %v311_v13 }
  0xdc   : > { %v302_v15 = vpop.f32.mrf.mxu0 }
  0xdd   : > { %v303_v16 = vadd.f32 %v480_v14, %v302_v15 }
  0xde   : > { %v512_v17 = vpop.f32.mrf.mxu0 }
  0xdf   : > { %v307_v18 = vmul.f32 0.70710677, %v303_v16  ;;  %v306_v20 = vmul.f32 0.5, %v303_v16 }
  0xe1   : > { %573 = verf.f32 %v307_v18 }
  0xee   : > { %v574_v19 = vpop.eup %573 }
  0xef   : > { %v309_v21 = vadd.f32 1.0, %v574_v19 }
  0xf1   : > { %v310_v22 = vmul.f32 %v309_v21, %v306_v20 }
  0xf3   : > { %530 = vmatmul.mubr.msk.f32.vlgmr.msra.gmra.mxu1 %vm326_vm2, %v310_v22 }
 0x1b3   : > { %v396_v24 = vpop.f32.mrf.mxu1 }
 0x1b4   : > { %v397_v25 = vadd.f32 %v482_v23, %v396_v24 }
 0x1b5   : > { %v531_v26 = vpop.f32.mrf.mxu1 }
 0x1b6   : > { %400 = vst.msk [vmem:[%s215_s9] sm:$0xff] %vm232_vm1, %v397_v25 }
 0x1b7   : > { %588 = shalt.err (!%p585_p3)
}
 0x1b8   : > { %s589_s23 = scalar_lea.hbm %s771_s13, 128  ;;  %s593_s30 = scalar_lea.hbm %s812_s5, 256 }
 0x1b9   : > { %p590_p4 = scmp.ne.s32.totalorder %s771_s13, %s589_s23  ;;  %p594_p9 = scmp.lt.s32.totalorder %s771_s13, %s812_s5 }
 0x1ba   : > { %p595_p10 = scmp.lt.s32.totalorder %s593_s30, %s589_s23 }
 0x1bb   : > { %p591_p7 = pnand %p590_p4, %p708_p5 }
 0x1bc   : > { %p596_p11 = por %p595_p10, %p594_p9 }
 0x1bd   : > { %p592_p8 = pneg %p591_p7 }
 0x1bf   : > { %p597_p12 = pnand %p596_p11, %p592_p8 }
 0x1c1   : > { %600 = shalt.err (!%p597_p12)
}
 0x1c2   : > { %532 = dma.vmem_to_hbm [thread:$0]  (%p708_p5), %s416_s10, 128, %s771_s13, %s402_s14  }
 0x1c3 PF: > { %p538_p13 = scmp.ge.s32.totalorder %s635_s21, 2  ;;  %s427_s8 = sand.u32 1, %s623_s18  }
 0x1c4   : > { %s428_s9 = scalar_lea.sflag [#allocation3], %s427_s8 }
 0x1c5   : > { %p535_p0 = pnand %p538_p13, %p712_p6 }
 0x1c7   : > { %p536_p1 = pneg %p535_p0 }
 0x1c9   : > { %618 = dma.done.wait (%p536_p1), %s428_s9, 128  }
 0x1ca   : > { %620 = vsyncadd (%p536_p1), %s428_s9, 4294967168  ;;  %p15_p2 = scmp.ge.s32.totalorder %s695_s24, 4   ;;  %s815_s18 = smov %s627_s19 }
 0x1cb   : > { %s816_s19 = smov %s631_s20  ;;  %s817_s20 = smov %s706_s27 }
 0x1cc   : > { %s818_s21 = smov %s695_s24  ;;  %17 = sbr.rel (!%p15_p2) target bundleno = 3 (0x3), region = 75 }
 0x1d1   :  { %433 = vsyncpa [#allocation3], 1 }
 0x1d2   :  { %435 = vsyncpa [#allocation3 + $0x1], 1 }

</bundles_post_ra>
